<compile_context>
chip_gen: v5e
topology: v5e:2x2
jax: 0.10.0
libtpu: 0.0.40
codegen_flags: <defaults>
</compile_context>

<pallas_src>
import functools

import jax
import jax.numpy as jnp
from jax.experimental import pallas as pl
from jax.experimental.pallas import tpu as pltpu

BN_EPS = 1e-5


def _round_up(n, m):
    return ((n + m - 1) // m) * m


def _fc1_relu(x_ref, w1_ref, b1_ref):
    """relu(x @ w1 + b1) with bf16 (or matmul-dtype) MXU inputs and f32 accumulation."""
    x = x_ref[...]
    h = jnp.dot(x.astype(w1_ref.dtype), w1_ref[...],
                preferred_element_type=jnp.float32)
    return jnp.maximum(h + b1_ref[...], 0.0)


def _stats_kernel(x_ref, w1_ref, b1_ref, stat_ref, *, batch, tile_rows, mask_rows):
    """Pass 1: per-tile partial BN statistics (sum, sum of squares) of relu(fc1)."""
    h = _fc1_relu(x_ref, w1_ref, b1_ref)                       # (tile_rows, H) f32
    if mask_rows:
        # Zero out padded rows of the last partial tile so they don't pollute the stats.
        row = (jax.lax.broadcasted_iota(jnp.int32, h.shape, 0)
               + pl.program_id(0) * tile_rows)
        h = jnp.where(row < batch, h, 0.0)
    stat_ref[0, 0:1, :] = jnp.sum(h, axis=0, keepdims=True)    # sum(h)
    stat_ref[0, 1:2, :] = jnp.sum(h * h, axis=0, keepdims=True)  # sum(h*h)


def _apply_kernel(x_ref, w1_ref, b1_ref, scale_ref, shift_ref, w2_ref, b2_ref, o_ref):
    """Pass 2: recompute relu(fc1), apply folded BN, fc2 + sigmoid, lane-dense store."""
    h = _fc1_relu(x_ref, w1_ref, b1_ref)                       # (tile_rows, H) f32
    h = h * scale_ref[...] + shift_ref[...]                    # folded BatchNorm (f32)
    # fc2 as (1, H) @ (H, tile_rows): logits come out lane-major -> lane-dense output row.
    logits = jnp.dot(w2_ref[...], h.T,
                     preferred_element_type=jnp.float32) + b2_ref[...]   # (1, tile_rows)
    o_ref[...] = jax.nn.sigmoid(logits).astype(o_ref.dtype)[None]        # (1, 1, tile_rows)


def domain_discriminator(x, w1, b1, gamma, beta, w2, b2, *,
                         block_rows=512, matmul_dtype=jnp.bfloat16):
    """Forward pass of DomainDiscriminator.

    x:  [B, n_input] f32 (batch-major, feature last — same as nn.Linear input).
    w1: [n_input, n_hidden], w2: [n_hidden, 1]  (transposed relative to PyTorch storage).
    Returns [B, 1] f32 sigmoid probabilities (BatchNorm1d in training mode, batch stats).
    """
    assert block_rows % 128 == 0
    B, n_input = x.shape
    n_hidden = w1.shape[1]

    # Batch tiling: single tile for small batches, fixed MXU-friendly tiles + padding otherwise.
    tile_rows = _round_up(B, 8) if B <= block_rows else block_rows
    b_pad = _round_up(B, tile_rows)
    num_tiles = b_pad // tile_rows
    x = x.astype(jnp.float32)
    if b_pad != B:
        x = jnp.pad(x, ((0, b_pad - B), (0, 0)))

    # Parameter plumbing (done once, outside the grid).
    w1_c = w1.astype(matmul_dtype)                       # bf16 weights -> native MXU rate
    b1_r = b1.reshape(1, n_hidden).astype(jnp.float32)
    w2_row = w2.reshape(1, n_hidden).astype(jnp.float32)
    b2_r = b2.reshape(1, 1).astype(jnp.float32)

    x_spec = pl.BlockSpec((tile_rows, n_input), lambda i: (i, 0))
    w1_spec = pl.BlockSpec((n_input, n_hidden), lambda i: (0, 0))
    row_spec = pl.BlockSpec((1, n_hidden), lambda i: (0, 0))
    scalar_spec = pl.BlockSpec((1, 1), lambda i: (0, 0))
    parallel = pltpu.CompilerParams(dimension_semantics=("parallel",))

    matmul_flops = 2 * b_pad * n_input * n_hidden
    weight_bytes = (n_input * n_hidden * jnp.dtype(matmul_dtype).itemsize
                    + 4 * (3 * n_hidden + 1))
    x_bytes = 4 * b_pad * n_input

    # ---------------- pass 1: per-tile sum(h), sum(h*h) ----------------
    stats = pl.pallas_call(
        functools.partial(_stats_kernel, batch=B, tile_rows=tile_rows,
                          mask_rows=(b_pad != B)),
        out_shape=jax.ShapeDtypeStruct((num_tiles, 2, n_hidden), jnp.float32),
        grid=(num_tiles,),
        in_specs=[x_spec, w1_spec, row_spec],
        out_specs=pl.BlockSpec((1, 2, n_hidden), lambda i: (i, 0, 0)),
        compiler_params=parallel,
        cost_estimate=pl.CostEstimate(
            flops=matmul_flops + 4 * b_pad * n_hidden,
            transcendentals=0,
            bytes_accessed=x_bytes + weight_bytes + 4 * num_tiles * 2 * n_hidden),
    )(x, w1_c, b1_r)

    # -------- tiny cross-tile reduction + BN folding (num_tiles x n_hidden, in XLA) --------
    totals = jnp.sum(stats, axis=0)                                   # (2, H)
    mean = totals[0] / B                                              # full-batch mean
    var = jnp.maximum(totals[1] / B - mean * mean, 0.0)               # biased variance
    inv = jax.lax.rsqrt(var + BN_EPS)
    scale_v = gamma.astype(jnp.float32) * inv
    shift_v = beta.astype(jnp.float32) - mean * scale_v
    scale = scale_v.reshape(1, n_hidden)
    shift = shift_v.reshape(1, n_hidden)

    # ---------------- pass 2: normalize + fc2 + sigmoid ----------------
    out = pl.pallas_call(
        _apply_kernel,
        out_shape=jax.ShapeDtypeStruct((num_tiles, 1, tile_rows), jnp.float32),
        grid=(num_tiles,),
        in_specs=[x_spec, w1_spec, row_spec, row_spec, row_spec, row_spec, scalar_spec],
        out_specs=pl.BlockSpec((1, 1, tile_rows), lambda i: (i, 0, 0)),
        compiler_params=parallel,
        cost_estimate=pl.CostEstimate(
            flops=matmul_flops + 6 * b_pad * n_hidden,
            transcendentals=b_pad,
            bytes_accessed=x_bytes + weight_bytes + 4 * b_pad),
    )(x, w1_c, b1_r, scale, shift, w2_row, b2_r)

    return out.reshape(-1)[:B].reshape(B, 1)


def _reference(x, w1, b1, gamma, beta, w2, b2):
    """Pure-JAX reference mirroring the kernel's compute path (bf16 fc1, f32 BN/fc2)."""
    h = jnp.dot(x.astype(jnp.bfloat16), w1.astype(jnp.bfloat16),
                preferred_element_type=jnp.float32) + b1
    h = jnp.maximum(h, 0.0)
    mean = jnp.mean(h, axis=0, keepdims=True)
    var = jnp.mean(h * h, axis=0, keepdims=True) - mean * mean
    hn = (h - mean) * jax.lax.rsqrt(var + BN_EPS) * gamma + beta
    logits = jnp.dot(hn, w2, precision=jax.lax.Precision.HIGHEST) + b2
    return jax.nn.sigmoid(logits)


if __name__ == "__main__":
    key = jax.random.PRNGKey(0)
    k_x1, k_x2, k_w1, k_b1, k_w2, k_b2 = jax.random.split(key, 6)

    # Small shapes consistent with the module (defaults n_input = n_hidden = 256, scaled down).
    n_input, n_hidden = 32, 32

    lim1 = 1.0 / (n_input ** 0.5)
    w1 = jax.random.uniform(k_w1, (n_input, n_hidden), jnp.float32, -lim1, lim1)
    b1 = jax.random.uniform(k_b1, (n_hidden,), jnp.float32, -lim1, lim1)
    gamma = jnp.ones((n_hidden,), jnp.float32)    # BatchNorm1d default weight
    beta = jnp.zeros((n_hidden,), jnp.float32)    # BatchNorm1d default bias
    lim2 = 1.0 / (n_hidden ** 0.5)
    w2 = jax.random.uniform(k_w2, (n_hidden, 1), jnp.float32, -lim2, lim2)
    b2 = jax.random.uniform(k_b2, (1,), jnp.float32, -lim2, lim2)

    # Case 1: tiny batch, single tile.
    x1 = jax.random.normal(k_x1, (8, n_input), jnp.float32)
    out1 = jax.block_until_ready(domain_discriminator(x1, w1, b1, gamma, beta, w2, b2))
    ref1 = _reference(x1, w1, b1, gamma, beta, w2, b2)
    assert out1.shape == (8, 1)
    assert jnp.allclose(out1, ref1, atol=5e-3, rtol=5e-3), "case 1 mismatch vs reference"

    # Case 2: multi-tile batch with a padded partial last tile (exercises tiling + masking).
    x2 = jax.random.normal(k_x2, (200, n_input), jnp.float32)
    out2 = jax.block_until_ready(
        domain_discriminator(x2, w1, b1, gamma, beta, w2, b2, block_rows=128))
    ref2 = _reference(x2, w1, b1, gamma, beta, w2, b2)
    assert out2.shape == (200, 1)
    assert jnp.allclose(out2, ref2, atol=5e-3, rtol=5e-3), "case 2 mismatch vs reference"

    print("KERNEL_OK")
</pallas_src>

<mosaic_0001>
module attributes {stable_mosaic.version = 11 : i64} {
  func.func @_stats_kernel(%arg0: i32, %arg1: memref<8x32xf32, #tpu.memory_space<vmem>>, %arg2: memref<32x32xbf16, #tpu.memory_space<vmem>>, %arg3: memref<1x32xf32, #tpu.memory_space<vmem>>, %arg4: memref<1x2x32xf32, #tpu.memory_space<vmem>>) attributes {dimension_semantics = [#tpu.dimension_semantics<parallel>], iteration_bounds = array<i64: 1>, scalar_prefetch = 0 : i64, scratch_operands = 0 : i64, tpu.core_type = #tpu.core_type<tc>, window_params = [{transform_indices = @transform_0, window_bounds = array<i64: 8, 32>}, {pipeline_mode = #tpu.pipeline_mode<synchronous>, transform_indices = @transform_1, window_bounds = array<i64: 32, 32>}, {pipeline_mode = #tpu.pipeline_mode<synchronous>, transform_indices = @transform_2, window_bounds = array<i64: 1, 32>}, {transform_indices = @transform_3, window_bounds = array<i64: 1, 2, 32>}]} {
    %c0 = arith.constant 0 : index
    %c0_0 = arith.constant 0 : index
    %0 = vector.load %arg1[%c0, %c0_0] : memref<8x32xf32, #tpu.memory_space<vmem>>, vector<8x32xf32>
    %1 = arith.truncf %0 : vector<8x32xf32> to vector<8x32xbf16>
    %c0_1 = arith.constant 0 : index
    %c0_2 = arith.constant 0 : index
    %2 = vector.load %arg2[%c0_1, %c0_2] : memref<32x32xbf16, #tpu.memory_space<vmem>>, vector<32x32xbf16>
    %cst = arith.constant dense<0.000000e+00> : vector<8x32xf32>
    %3 = tpu.matmul %1, %2, %cst {dimension_numbers = #tpu.dot_dimension_numbers<[1], [0], [0], [1], [0, 0, 1, 1], [], []>} : vector<8x32xbf16>, vector<32x32xbf16>, vector<8x32xf32> -> vector<8x32xf32>
    %c0_3 = arith.constant 0 : index
    %c0_4 = arith.constant 0 : index
    %4 = vector.load %arg3[%c0_3, %c0_4] : memref<1x32xf32, #tpu.memory_space<vmem>>, vector<1x32xf32>
    %5 = vector.broadcast %4 : vector<1x32xf32> to vector<8x32xf32>
    %6 = arith.addf %3, %5 : vector<8x32xf32>
    %cst_5 = arith.constant 0.000000e+00 : f32
    %7 = vector.broadcast %cst_5 : f32 to vector<8x32xf32>
    %8 = arith.maximumf %6, %7 : vector<8x32xf32>
    %cst_6 = arith.constant dense<0.000000e+00> : vector<32xf32>
    %9 = vector.multi_reduction <add>, %8, %cst_6 [0] : vector<8x32xf32> to vector<32xf32>
    %10 = vector.shape_cast %9 : vector<32xf32> to vector<1x32xf32>
    %c0_7 = arith.constant 0 : index
    %c0_8 = arith.constant 0 : index
    %c0_9 = arith.constant 0 : index
    %11 = vector.load %arg4[%c0_7, %c0_8, %c0_9] : memref<1x2x32xf32, #tpu.memory_space<vmem>>, vector<1x1x32xf32>
    %12 = vector.shape_cast %11 : vector<1x1x32xf32> to vector<1x32xf32>
    %13 = vector.shape_cast %10 : vector<1x32xf32> to vector<1x1x32xf32>
    tpu.vector_store %arg4[%c0_7, %c0_8, %c0_9], %13 {strides = array<i32>} : memref<1x2x32xf32, #tpu.memory_space<vmem>>, vector<1x1x32xf32>,
    %14 = arith.mulf %8, %8 : vector<8x32xf32>
    %cst_10 = arith.constant dense<0.000000e+00> : vector<32xf32>
    %15 = vector.multi_reduction <add>, %14, %cst_10 [0] : vector<8x32xf32> to vector<32xf32>
    %16 = vector.shape_cast %15 : vector<32xf32> to vector<1x32xf32>
    %c0_11 = arith.constant 0 : index
    %c1 = arith.constant 1 : index
    %c0_12 = arith.constant 0 : index
    %17 = vector.load %arg4[%c0_11, %c1, %c0_12] : memref<1x2x32xf32, #tpu.memory_space<vmem>>, vector<1x1x32xf32>
    %18 = vector.shape_cast %17 : vector<1x1x32xf32> to vector<1x32xf32>
    %19 = vector.shape_cast %16 : vector<1x32xf32> to vector<1x1x32xf32>
    tpu.vector_store %arg4[%c0_11, %c1, %c0_12], %19 {strides = array<i32>} : memref<1x2x32xf32, #tpu.memory_space<vmem>>, vector<1x1x32xf32>,
    return
  }
  func.func @transform_0(%arg0: i32) -> (i32, i32) {
    %c0_i32 = arith.constant 0 : i32
    %c0_i32_0 = arith.constant 0 : i32
    return %arg0, %c0_i32 : i32, i32
  }
  func.func @transform_1(%arg0: i32) -> (i32, i32) {
    %c0_i32 = arith.constant 0 : i32
    %c0_i32_0 = arith.constant 0 : i32
    %c0_i32_1 = arith.constant 0 : i32
    return %c0_i32, %c0_i32_0 : i32, i32
  }
  func.func @transform_2(%arg0: i32) -> (i32, i32) {
    %c0_i32 = arith.constant 0 : i32
    %c0_i32_0 = arith.constant 0 : i32
    %c0_i32_1 = arith.constant 0 : i32
    return %c0_i32, %c0_i32_0 : i32, i32
  }
  func.func @transform_3(%arg0: i32) -> (i32, i32, i32) {
    %c0_i32 = arith.constant 0 : i32
    %c0_i32_0 = arith.constant 0 : i32
    %c0_i32_1 = arith.constant 0 : i32
    return %arg0, %c0_i32, %c0_i32_0 : i32, i32, i32
  }
}

</mosaic_0001>

<bundles_post_ra>
// kernel: tpu_custom_call.1
= control target key start
LH: loop header
LB: loop body
LE: loop exit
PB: predicated region body
PF: predicated region fallthrough
CT: control target
= control target key end

     0   :  { %8 = vsyncpa [#allocation3], 0  ;;  %s254_s0 = inlined_call_operand.hbm [shape: f32[8,32], index: 0, kind: input, shape index: {}]   ;;  %s255_s1 = inlined_call_operand.hbm [shape: bf16[32,32], index: 1, kind: input, shape index: {}]   ;;  %s256_s2 = inlined_call_operand.vmem [shape: f32[1,32], index: 2, kind: input, shape index: {}]   ;;  %s257_s3 = inlined_call_operand.hbm [shape: f32[1,2,32], index: 3, kind: output, shape index: {}]  }
   0x1   :  { %9 = vsyncpa [#allocation6], 0 }
   0x2   :  { %10 = vsyncpa [#allocation4], 0  ;;  %s16_s14 = sshll.u32 %s254_s0, 4  ;;  %s217_s15 = smov [#allocation2]   ;;  %s17_s14 = int_to_ptr.hbm [resolvable:$true] %s16_s14 }
   0x3   :  { %s18_s16 = sshll.u32 %s217_s15, 4  ;;  %s26_s19 = sshll.u32 %s255_s1, 4  ;;  %s19_s16 = int_to_ptr.vmem [resolvable:$true] %s18_s16  ;;  %s27_s19 = int_to_ptr.hbm [resolvable:$true] %s26_s19 }
   0x4   :  { %21 = dma.hbm_to_vmem [thread:$0]  %s17_s14, 128, %s19_s16, [#allocation3]  }
   0x5   :  { %s218_s20 = smov [#allocation5]   ;;  %s219_s22 = smov 64  }
   0x6   :  { %s28_s21 = sshll.u32 %s218_s20, 4  ;;  %s220_s23 = smov 4   ;;  %s29_s21 = int_to_ptr.vmem [resolvable:$true] %s28_s21 }
   0x7   :  { %34 = dma.hbm_to_vmem [thread:$0]  %s27_s19, 256, %s29_s21, [#allocation6], %s219_s22, %s219_s22, %s220_s23  }
   0x8   :  { %211 = dma.done.wait [#allocation3], 128  }
   0x9   :  { %212 = vsyncadd [#allocation3], 4294967168 }
   0xa   :  { %213 = dma.done.wait [#allocation6], 256  }
   0xb   :  { %214 = vsyncadd [#allocation6], 4294967040  ;;  %v132_v0 = vld [vmem:[#allocation5 + $0x8] sm:$0xff]  ;;  %v131_v1 = vld [vmem:[#allocation5] sm:$0xff]  ;;  %vm68_vm0 = vcmask 261120   ;;  %vm93_vm1 = vcmask 253952  }
   0xc   :  { %78 = vmatpush.bf16.msra.mxu0 %v132_v0  ;;  %v46_v2 = vld [vmem:[#allocation2] sm:$0xff]  ;;  %s221_s24 = smov [#allocation7]   ;;  %s111_s27 = sshll.u32 %s257_s3, 4  ;;  %s112_s27 = int_to_ptr.hbm [resolvable:$true] %s111_s27 }
   0xd   :  { %v47_v3 = vpack.c.bf16 %v46_v2, %v46_v2  ;;  %v138_v4 = vld [vmem:[%s256_s2] ss:$0 sm:$0xff]  ;;  %s109_s25 = sshll.u32 %s221_s24, 4  ;;  %s110_s25 = int_to_ptr.vmem [resolvable:$true] %s109_s25 }
  0x10   :  { %79 = vmatpush.bf16.msra.mxu0 %v131_v1 }
  0x13   :  { %130 = vmatmul.msk.bf16.vlgmr.msra.gmra.mxu0 %vm68_vm0, %v47_v3 }
  0x90   :  { %v81_v5 = vpop.f32.mrf.mxu0 }
  0x91   :  { %v82_v6 = vadd.f32 %v138_v4, %v81_v5 }
  0x93   :  { %v85_v7 = vmax.f32 %v82_v6, 0.0 }
  0x95   :  { %v86_v8 = vsel %vm68_vm0, %v85_v7, 0.0  ;;  %v95_v9 = vmul.f32 %v85_v7, %v85_v7 }
  0x96   :  { %v87_v10 = vrot.slane %v86_v8, 4 }
  0x97   :  { %v96_v11 = vsel %vm68_vm0, %v95_v9, 0.0 }
  0x98   :  { %v88_v12 = vadd.f32 %v87_v10, %v86_v8  ;;  %v97_v13 = vrot.slane %v96_v11, 4  ;;  %v83_v14 = vpop.f32.mrf.mxu0 }
  0x9a   :  { %v89_v15 = vrot.slane %v88_v12, 2  ;;  %v98_v16 = vadd.f32 %v97_v13, %v96_v11 }
  0x9c   :  { %v90_v17 = vadd.f32 %v89_v15, %v88_v12  ;;  %v99_v18 = vrot.slane %v98_v16, 2 }
  0x9e   :  { %v91_v19 = vrot.slane %v90_v17, 1  ;;  %v100_v20 = vadd.f32 %v99_v18, %v98_v16 }
  0xa0   :  { %v92_v21 = vadd.f32 %v91_v19, %v90_v17  ;;  %v101_v22 = vrot.slane %v100_v20, 1 }
  0xa2   :  { %v102_v23 = vadd.f32 %v101_v22, %v100_v20  ;;  %94 = vst.msk [vmem:[#allocation7] sm:$0x1] %vm93_vm1, %v92_v21 }
  0xa4   :  { %103 = vst.msk [vmem:[#allocation7 + $0x1] sm:$0x1] %vm93_vm1, %v102_v23 }
  0xa5   :  { %114 = dma.vmem_to_hbm [thread:$0]  %s110_s25, 32, %s112_s27, [#allocation4]  }
  0xa6   :  { %215 = dma.done.wait [#allocation4], 32  }
  0xa7   :  { %216 = vsyncadd [#allocation4], 4294967264 }
  0xa8   :  { %119 = vsyncpa [#allocation3], 1 }
  0xa9   :  { %120 = vsyncpa [#allocation6], 1 }
  0xaa   :  { %121 = vsyncpa [#allocation4], 1 }

</bundles_post_ra>
